<compile_context>
chip_gen: v5e
topology: v5e:2x2
jax: 0.10.0
libtpu: 0.0.40
codegen_flags: <defaults>
</compile_context>

<pallas_src>
import functools

import jax
import jax.numpy as jnp
from jax.experimental import pallas as pl
from jax.experimental.pallas import tpu as pltpu


def _round_up(n, m):
    return ((n + m - 1) // m) * m


def _policy_mu_kernel(xt_ref, w1t_ref, w2t_ref, bias_ref, mut_ref, *,
                      hidden, action_dim, h_rows):
    """One batch tile of the mu-MLP in transposed (batch-on-lanes) layout.

    xt_ref:   (S, tB)                 batch tile streams over the grid
    w1t_ref:  (H, S)                  resident across the batch grid
    w2t_ref:  (A, H)                  resident across the batch grid
    bias_ref: (h_rows + a_rows, 1)    packed [b1 ; pad ; b2 ; pad], f32, 8-row aligned
    mut_ref:  (A, tB)
    """
    # Hidden layer: (H, S) @ (S, tB) -> (H, tB), f32 accumulation on the MXU.
    h = jnp.dot(w1t_ref[...], xt_ref[...], preferred_element_type=jnp.float32)
    b1 = bias_ref[:hidden, :]                               # (H, 1) broadcasts over lanes
    h = jnp.maximum(h + b1, 0.0)                            # bias + ReLU in f32 (v5e-safe)
    # Output layer: (A, H) @ (H, tB) -> (A, tB).
    b2 = bias_ref[h_rows:h_rows + action_dim, :]            # 8-row-aligned slice
    mu = jnp.dot(w2t_ref[...], h.astype(w2t_ref.dtype),
                 preferred_element_type=jnp.float32) + b2
    mut_ref[...] = mu.astype(mut_ref.dtype)


def nn_gaussian_policy_forward(x, w1, b1, w2, b2, sigma, *,
                               block_b=8192,
                               min_pallas_batch=128,
                               compute_dtype=jnp.float32,
                               core_parallel=False):
    """NNGaussianPolicy.forward: returns (mu(x), clip(exp(sigma), 1e-6, 3.0)).

    Args:
      x:     (B, state_dim) float32
      w1:    (state_dim, hidden) float32      (pre-transposed nn.Linear weight)
      b1:    (hidden,) float32
      w2:    (hidden, action_dim) float32     (pre-transposed nn.Linear weight)
      b2:    (action_dim,) float32
      sigma: (action_dim,) float32
      block_b: batch-tile lane width (multiple of 128); whole batch if it fits.
      min_pallas_batch: below this batch size use a plain-XLA fast path.
      compute_dtype: jnp.float32 (exact) or jnp.bfloat16 (v6e/v7x bandwidth win;
        accumulation / bias / ReLU stay f32).
      core_parallel: use pltpu.CORE_PARALLEL on the batch axis (v7x dual-TC split;
        no-op on single-TC chips).  Default off.
    Returns:
      mu: (B, action_dim) float32, sd: (action_dim,) float32
    """
    B, S = x.shape
    H = w1.shape[1]
    A = w2.shape[1]

    # sd depends only on parameters, never on the state: compute once in plain JAX
    # instead of DMA-ing sigma in and sd out of a latency-bound kernel on every call.
    sd = jnp.clip(jnp.exp(sigma.astype(jnp.float32)), 1e-6, 3.0)

    # Tiny-batch fast path: at RL-inference batch sizes the whole forward is a few
    # hundred FLOPs; a fused XLA dot is strictly faster than pallas_call launch + DMAs.
    if B < min_pallas_batch:
        h = jnp.maximum(x.astype(jnp.float32) @ w1.astype(jnp.float32)
                        + b1.astype(jnp.float32), 0.0)
        mu = h @ w2.astype(jnp.float32) + b2.astype(jnp.float32)
        return mu.astype(jnp.float32), sd

    # --- lane-dense transposed layout (batch on lanes) ---
    xt = x.T.astype(compute_dtype)            # (S, B)
    w1t = w1.T.astype(compute_dtype)          # (H, S)
    w2t = w2.T.astype(compute_dtype)          # (A, H)

    # Pack b1 / b2 into one 8-row-aligned column slab -> a single bias DMA.
    h_rows = _round_up(H, 8)
    a_rows = _round_up(A, 8)
    bias_slab = jnp.zeros((h_rows + a_rows, 1), jnp.float32)
    bias_slab = bias_slab.at[:H, 0].set(b1.astype(jnp.float32))
    bias_slab = bias_slab.at[h_rows:h_rows + A, 0].set(b2.astype(jnp.float32))

    # Batch tile on the lane axis: multiple of 128; one grid step when B fits block_b.
    # VMEM per step (f32, block_b=8192): x tile 512 KiB + mu tile 256 KiB, double
    # buffered ~1.5 MiB -- well under the scoped-VMEM default on v5e/v6e/v7x.
    tB = min(block_b, _round_up(B, 128))
    B_pad = _round_up(B, tB)
    if B_pad != B:
        xt = jnp.pad(xt, ((0, 0), (0, B_pad - B)))          # zero-pad extra lanes
    grid = (B_pad // tB,)

    kernel = functools.partial(_policy_mu_kernel,
                               hidden=H, action_dim=A, h_rows=h_rows)
    dim_sem = (pltpu.CORE_PARALLEL,) if core_parallel else ("parallel",)

    mu_t = pl.pallas_call(
        kernel,
        out_shape=jax.ShapeDtypeStruct((A, B_pad), jnp.float32),
        grid=grid,
        in_specs=[
            pl.BlockSpec((S, tB), lambda i: (0, i)),                 # x^T streams over B
            pl.BlockSpec((H, S), lambda i: (0, 0)),                  # W1^T resident
            pl.BlockSpec((A, H), lambda i: (0, 0)),                  # W2^T resident
            pl.BlockSpec((h_rows + a_rows, 1), lambda i: (0, 0)),    # packed biases
        ],
        out_specs=pl.BlockSpec((A, tB), lambda i: (0, i)),           # lane-dense mu^T
        compiler_params=pltpu.CompilerParams(dimension_semantics=dim_sem),
    )(xt, w1t, w2t, bias_slab)

    mu = mu_t[:, :B].T                                               # back to (B, A)
    return mu, sd


def _reference(x, w1, b1, w2, b2, sigma):
    h = jnp.maximum(x @ w1 + b1, 0.0)
    mu = h @ w2 + b2
    sd = jnp.clip(jnp.exp(sigma), 1e-6, 3.0)
    return mu, sd


if __name__ == "__main__":
    # Small shapes consistent with the module's non-image forward path.
    batch = 8
    state_dim = 16
    hidden = 32
    action_dim = 8

    key = jax.random.PRNGKey(0)
    kx, kw1, kb1, kw2, kb2, kx2 = jax.random.split(key, 6)

    x = jax.random.normal(kx, (batch, state_dim), dtype=jnp.float32)
    # Deterministic parameter init (synthetic; nn.Linear shapes, pre-transposed).
    w1 = jax.random.normal(kw1, (state_dim, hidden), dtype=jnp.float32) * 0.1
    b1 = jax.random.normal(kb1, (hidden,), dtype=jnp.float32) * 0.1
    w2 = jax.random.normal(kw2, (hidden, action_dim), dtype=jnp.float32) * 0.1
    b2 = jax.random.normal(kb2, (action_dim,), dtype=jnp.float32) * 0.1
    # self.sigma = torch.ones(action_dim)
    sigma = jnp.ones((action_dim,), dtype=jnp.float32)

    # 1) Force the Pallas path at the small demo batch (pads B=8 -> 128 lanes).
    mu, sd = nn_gaussian_policy_forward(x, w1, b1, w2, b2, sigma,
                                        min_pallas_batch=0)
    jax.block_until_ready((mu, sd))
    mu_ref, sd_ref = _reference(x, w1, b1, w2, b2, sigma)
    assert mu.shape == (batch, action_dim) and sd.shape == (action_dim,)
    assert jnp.allclose(mu, mu_ref, atol=1e-5), "mu mismatch (small batch)"
    assert jnp.allclose(sd, sd_ref, atol=1e-6), "sd mismatch"

    # 2) Default path at the same batch takes the tiny-batch XLA fast path.
    mu_fast, _ = nn_gaussian_policy_forward(x, w1, b1, w2, b2, sigma)
    jax.block_until_ready(mu_fast)
    assert jnp.allclose(mu_fast, mu_ref, atol=1e-5), "mu mismatch (fast path)"

    # 3) Ragged larger batch exercising a multi-step grid (B=300, tB=128 -> 3 steps).
    x_big = jax.random.normal(kx2, (300, state_dim), dtype=jnp.float32)
    mu_big, _ = nn_gaussian_policy_forward(x_big, w1, b1, w2, b2, sigma,
                                           block_b=128, min_pallas_batch=0)
    jax.block_until_ready(mu_big)
    mu_big_ref, _ = _reference(x_big, w1, b1, w2, b2, sigma)
    assert mu_big.shape == (300, action_dim)
    assert jnp.allclose(mu_big, mu_big_ref, atol=1e-5), "mu mismatch (grid batch)"

    # 4) Optional bf16 compute path (v6e/v7x bandwidth optimization), loose tolerance.
    mu_bf16, _ = nn_gaussian_policy_forward(x_big, w1, b1, w2, b2, sigma,
                                            min_pallas_batch=0,
                                            compute_dtype=jnp.bfloat16)
    jax.block_until_ready(mu_bf16)
    assert jnp.allclose(mu_bf16, mu_big_ref, atol=3e-2, rtol=3e-2), "mu mismatch (bf16)"

    # TODO(synk): pdf/rsample/score/optimize are torch.distributions + Adam training
    # machinery, not part of the forward hot path; only forward() is kernelized.
    # TODO(synk): from_image=True CNN front-end is not implemented here.
    print("KERNEL_OK")
</pallas_src>

<mosaic_0001>
module attributes {stable_mosaic.version = 11 : i64} {
  func.func @_policy_mu_kernel(%arg0: i32, %arg1: memref<16x128xf32, #tpu.memory_space<vmem>>, %arg2: memref<32x16xf32, #tpu.memory_space<vmem>>, %arg3: memref<8x32xf32, #tpu.memory_space<vmem>>, %arg4: memref<40x1xf32, #tpu.memory_space<vmem>>, %arg5: memref<8x128xf32, #tpu.memory_space<vmem>>) attributes {dimension_semantics = [#tpu.dimension_semantics<parallel>], iteration_bounds = array<i64: 1>, scalar_prefetch = 0 : i64, scratch_operands = 0 : i64, tpu.core_type = #tpu.core_type<tc>, window_params = [{transform_indices = @transform_0, window_bounds = array<i64: 16, 128>}, {pipeline_mode = #tpu.pipeline_mode<synchronous>, transform_indices = @transform_1, window_bounds = array<i64: 32, 16>}, {pipeline_mode = #tpu.pipeline_mode<synchronous>, transform_indices = @transform_2, window_bounds = array<i64: 8, 32>}, {pipeline_mode = #tpu.pipeline_mode<synchronous>, transform_indices = @transform_3, window_bounds = array<i64: 40, 1>}, {transform_indices = @transform_4, window_bounds = array<i64: 8, 128>}]} {
    %c0 = arith.constant 0 : index
    %c0_0 = arith.constant 0 : index
    %0 = vector.load %arg2[%c0, %c0_0] : memref<32x16xf32, #tpu.memory_space<vmem>>, vector<32x16xf32>
    %c0_1 = arith.constant 0 : index
    %c0_2 = arith.constant 0 : index
    %1 = vector.load %arg1[%c0_1, %c0_2] : memref<16x128xf32, #tpu.memory_space<vmem>>, vector<16x128xf32>
    %cst = arith.constant dense<0.000000e+00> : vector<32x128xf32>
    %2 = tpu.matmul %0, %1, %cst {dimension_numbers = #tpu.dot_dimension_numbers<[1], [0], [0], [1], [0, 0, 1, 1], [], []>} : vector<32x16xf32>, vector<16x128xf32>, vector<32x128xf32> -> vector<32x128xf32>
    %c0_3 = arith.constant 0 : index
    %c0_4 = arith.constant 0 : index
    %3 = vector.load %arg4[%c0_3, %c0_4] : memref<40x1xf32, #tpu.memory_space<vmem>>, vector<32x1xf32>
    %4 = vector.broadcast %3 : vector<32x1xf32> to vector<32x128xf32>
    %5 = arith.addf %2, %4 : vector<32x128xf32>
    %cst_5 = arith.constant 0.000000e+00 : f32
    %6 = vector.broadcast %cst_5 : f32 to vector<32x128xf32>
    %7 = arith.maximumf %5, %6 : vector<32x128xf32>
    %c32 = arith.constant 32 : index
    %c0_6 = arith.constant 0 : index
    %8 = vector.load %arg4[%c32, %c0_6] : memref<40x1xf32, #tpu.memory_space<vmem>>, vector<8x1xf32>
    %c0_7 = arith.constant 0 : index
    %c0_8 = arith.constant 0 : index
    %9 = vector.load %arg3[%c0_7, %c0_8] : memref<8x32xf32, #tpu.memory_space<vmem>>, vector<8x32xf32>
    %cst_9 = arith.constant dense<0.000000e+00> : vector<8x128xf32>
    %10 = tpu.matmul %9, %7, %cst_9 {dimension_numbers = #tpu.dot_dimension_numbers<[1], [0], [0], [1], [0, 0, 1, 1], [], []>} : vector<8x32xf32>, vector<32x128xf32>, vector<8x128xf32> -> vector<8x128xf32>
    %11 = vector.broadcast %8 : vector<8x1xf32> to vector<8x128xf32>
    %12 = arith.addf %10, %11 : vector<8x128xf32>
    %c0_10 = arith.constant 0 : index
    %c0_11 = arith.constant 0 : index
    %13 = vector.load %arg5[%c0_10, %c0_11] : memref<8x128xf32, #tpu.memory_space<vmem>>, vector<8x128xf32>
    tpu.vector_store %arg5[%c0_10, %c0_11], %12 {strides = array<i32>} : memref<8x128xf32, #tpu.memory_space<vmem>>, vector<8x128xf32>,
    return
  }
  func.func @transform_0(%arg0: i32) -> (i32, i32) {
    %c0_i32 = arith.constant 0 : i32
    %c0_i32_0 = arith.constant 0 : i32
    return %c0_i32, %arg0 : i32, i32
  }
  func.func @transform_1(%arg0: i32) -> (i32, i32) {
    %c0_i32 = arith.constant 0 : i32
    %c0_i32_0 = arith.constant 0 : i32
    %c0_i32_1 = arith.constant 0 : i32
    return %c0_i32, %c0_i32_0 : i32, i32
  }
  func.func @transform_2(%arg0: i32) -> (i32, i32) {
    %c0_i32 = arith.constant 0 : i32
    %c0_i32_0 = arith.constant 0 : i32
    %c0_i32_1 = arith.constant 0 : i32
    return %c0_i32, %c0_i32_0 : i32, i32
  }
  func.func @transform_3(%arg0: i32) -> (i32, i32) {
    %c0_i32 = arith.constant 0 : i32
    %c0_i32_0 = arith.constant 0 : i32
    %c0_i32_1 = arith.constant 0 : i32
    return %c0_i32, %c0_i32_0 : i32, i32
  }
  func.func @transform_4(%arg0: i32) -> (i32, i32) {
    %c0_i32 = arith.constant 0 : i32
    %c0_i32_0 = arith.constant 0 : i32
    return %c0_i32, %arg0 : i32, i32
  }
}

</mosaic_0001>

<bundles_post_ra>
// kernel: tpu_custom_call.1
= control target key start
LH: loop header
LB: loop body
LE: loop exit
PB: predicated region body
PF: predicated region fallthrough
CT: control target
= control target key end

     0   :  { %vm48_vm0 = vcmask 130048   ;;  %v182_v4 = vmov 0   ;;  %s252_s0 = inlined_call_operand.vmem [shape: f32[16,128], index: 0, kind: input, shape index: {}]   ;;  %s253_s1 = inlined_call_operand.vmem [shape: f32[32,16], index: 1, kind: input, shape index: {}]   ;;  %s254_s2 = inlined_call_operand.vmem [shape: f32[8,32], index: 2, kind: input, shape index: {}]   ;;  %s255_s3 = inlined_call_operand.vmem [shape: f32[40,1], index: 3, kind: input, shape index: {}]   ;;  %s256_s4 = inlined_call_operand.hbm [shape: f32[8,128], index: 4, kind: output, shape index: {}]  }
   0x1   :  { %v23_v0 = vld [vmem:[%s252_s0 + $0x8] sm:$0xff]  ;;  %v22_v1 = vld [vmem:[%s252_s0] sm:$0xff]  ;;  %v21_v3 = vld [vmem:[%s253_s1 + $0x18] sm:$0xff]  ;;  %153 = vset.pattern.permute.xlu0 %v182_v4 }
   0x2   :  { %147 = vmatpush.msra.mxu2 %v23_v0  ;;  %148 = vmatpush.msra.mxu3 %v23_v0  ;;  %v19_v2 = vld [vmem:[%s253_s1 + $0x8] sm:$0xff]  ;;  %v27_v5 = vld [vmem:[%s255_s3 + $0x18] sm:$0xff]  ;;  %v18_v6 = vld [vmem:[%s253_s1] sm:$0xff] }
   0x3   :  { %75 = vmatpush.msra.mxu0 %v23_v0 }
   0x4   :  { %149 = vmatpush.msra.mxu2 %v22_v1  ;;  %150 = vmatpush.msra.mxu3 %v22_v1 }
   0x5   :  { %9 = vsyncpa [#allocation3], 0  ;;  %143 = vmatmul.msk.f32.vlgmr.msra.gmra.mxu2 %vm48_vm0, %v19_v2  ;;  %145 = vmatmul.msk.f32.vlgmr.msra.gmra.mxu3 %vm48_vm0, %v21_v3  ;;  %v25_v7 = vld [vmem:[%s255_s3 + $0x8] sm:$0xff]  ;;  %v20_v8 = vld [vmem:[%s253_s1 + $0x10] sm:$0xff]  ;;  %vm101_vm1 = vcmask 261120   ;;  %s183_s10 = smov [#allocation2]  }
   0x6   :  { %45 = vperm.xlu0 %153, %v27_v5   ;;  %76 = vmatpush.msra.mxu0 %v22_v1  ;;  %v26_v9 = vld [vmem:[%s255_s3 + $0x10] sm:$0xff]  ;;  %v24_v10 = vld [vmem:[%s255_s3] sm:$0xff]  ;;  %s131_s11 = sshll.u32 %s183_s10, 4  ;;  %s133_s14 = sshll.u32 %s256_s4, 4  ;;  %s132_s11 = int_to_ptr.vmem [resolvable:$true] %s131_s11  ;;  %s134_s14 = int_to_ptr.hbm [resolvable:$true] %s133_s14 }
   0x7   :  { %142 = vmatmul.msk.f32.vlgmr.msra.gmra.mxu0 %vm48_vm0, %v18_v6  ;;  %154 = vset.pattern.permute.xlu1 %v182_v4  ;;  %v94_v11 = vld [vmem:[%s255_s3 + $0x20] sm:$0xff] }
   0x8   :  { %35 = vperm.xlu1 %154, %v25_v7   ;;  %155 = vset.pattern.permute.xlu2 %v182_v4  ;;  %v95_v28 = vld [vmem:[%s254_s2] sm:$0xff] }
   0x9   :  { %98 = vperm.xlu2 %155, %v94_v11  }
   0xd   :  { %144 = vmatmul.msk.f32.gmra.mxu2 %vm48_vm0, %v20_v8 }
   0xe   :  { %40 = vperm.xlu0 %153, %v26_v9  }
  0x10   :  { %30 = vperm.xlu1 %154, %v24_v10  }
  0x63   :  { %v99_v29 = vpop.permute.xlu2 %98 }
  0x78   :  { %v46_v12 = vpop.permute.xlu0 %45 }
  0x7a   :  { %v36_v13 = vpop.permute.xlu1 %35 }
  0x80   :  { %v41_v18 = vpop.permute.xlu0 %40 }
  0x82   :  { %v31_v19 = vpop.permute.xlu1 %30 }
  0x84   :  { %v78_v20 = vpop.f32.mrf.mxu0 }
  0x85   :  { %v79_v24 = vadd.f32 %v78_v20, %v31_v19 }
  0x87   :  { %v90_v27 = vmax.f32 %v79_v24, 0.0 }
  0x88   :  { %v81_v14 = vpop.f32.mrf.mxu2  ;;  %v87_v15 = vpop.f32.mrf.mxu3 }
  0x89   :  { %v88_v16 = vadd.f32 %v87_v15, %v46_v12  ;;  %v82_v22 = vadd.f32 %v81_v14, %v36_v13 }
  0x8b   :  { %v93_v17 = vmax.f32 %v88_v16, 0.0  ;;  %v91_v26 = vmax.f32 %v82_v22, 0.0 }
  0x8d   :  { %117 = vmatpush.msra.mxu1 %v93_v17 }
  0x90   :  { %v84_v21 = vpop.f32.mrf.mxu2 }
  0x91   :  { %v85_v23 = vadd.f32 %v84_v21, %v41_v18 }
  0x93   :  { %v92_v25 = vmax.f32 %v85_v23, 0.0 }
  0x95   :  { %118 = vmatpush.msra.mxu1 %v92_v25 }
  0x97   :  { %119 = vmatpush.msra.mxu1 %v91_v26 }
  0x99   :  { %120 = vmatpush.msra.mxu1 %v90_v27 }
  0x9a   :  { %146 = vmatmul.msk.f32.vlgmr.msra.gmra.mxu1 %vm101_vm1, %v95_v28 }
 0x117   :  { %v122_v30 = vpop.f32.mrf.mxu1 }
 0x118   :  { %v123_v31 = vadd.f32 %v122_v30, %v99_v29 }
 0x11a   :  { %125 = vst [vmem:[#allocation2] sm:$0xff] %v123_v31 }
 0x11b   :  { %136 = dma.vmem_to_hbm [thread:$0]  %s132_s11, 128, %s134_s14, [#allocation3]  }
 0x11c   :  { %180 = dma.done.wait [#allocation3], 128  }
 0x11d   :  { %181 = vsyncadd [#allocation3], 4294967168 }
 0x11e   :  { %141 = vsyncpa [#allocation3], 1 }

</bundles_post_ra>
